<compile_context>
chip_gen: v7x
topology: tpu7x:2x2x1
jax: 0.10.0
libtpu: 0.0.40
codegen_flags: <defaults>
</compile_context>

<pallas_src>
import math
import jax
import jax.numpy as jnp
from jax.experimental import pallas as pl
from jax.experimental.pallas import tpu as pltpu


def _make_kernel(groups, ws, hs_g):
    """Kernel over one (tile_t, input_size) x-block and the full weight.

    x_ref: (tile_t, groups*ws)   w_ref: (groups, ws, hs_g)
    o_ref: (tile_t, groups*hs_g)  (f32)
    Static Python loop over groups -> `groups` direct MXU matmuls, f32 acc,
    aligned lane-slice stores (ws/hs_g multiples of 128 keep slices on vreg
    boundaries; other sizes are still correct, just add lane copies).
    """

    def kernel(x_ref, w_ref, o_ref):
        x = x_ref[...]
        for g in range(groups):
            xg = x[:, g * ws:(g + 1) * ws]
            acc = jnp.dot(xg, w_ref[g], preferred_element_type=jnp.float32)
            o_ref[:, g * hs_g:(g + 1) * hs_g] = acc.astype(o_ref.dtype)

    return kernel


def grouped_linear_einsum_batched(x, weight, *, groups, input_size, hidden_size,
                                  compute_dtype=None, tile_t=256):
    """Batched GroupedLinearEinsum over T frames.

    x: any shape with T*input_size elements (reshaped to (T, input_size)).
    weight: (groups, ws, hs_g).
    compute_dtype: e.g. jnp.bfloat16 to halve weight HBM traffic (f32 acc kept).
    Returns (T, hidden_size) in float32.
    """
    ws = input_size // groups
    hs_g = hidden_size // groups

    x2 = x.reshape(-1, input_size)
    T = x2.shape[0]

    w = weight
    if compute_dtype is not None:
        x2 = x2.astype(compute_dtype)
        w = weight.astype(compute_dtype)

    # Tile the frame axis; keep the weight VMEM-resident across grid steps.
    if T <= tile_t:
        tile = T
        t_pad = T
    else:
        tile = max(8, (tile_t // 8) * 8)          # sublane-aligned tile
        t_pad = pl.cdiv(T, tile) * tile
        if t_pad != T:
            x2 = jnp.pad(x2, ((0, t_pad - T), (0, 0)))
    grid_t = t_pad // tile

    cost = pl.CostEstimate(
        flops=2 * t_pad * input_size * hs_g,
        transcendentals=0,
        bytes_accessed=(w.size * w.dtype.itemsize
                        + x2.size * x2.dtype.itemsize
                        + t_pad * hidden_size * 4),
    )

    out = pl.pallas_call(
        _make_kernel(groups, ws, hs_g),
        out_shape=jax.ShapeDtypeStruct((t_pad, hidden_size), jnp.float32),
        grid_spec=pltpu.PrefetchScalarGridSpec(
            num_scalar_prefetch=0,
            grid=(grid_t,),
            in_specs=[
                # x tile: pipelined over the frame axis.
                pl.BlockSpec((tile, input_size), lambda t: (t, 0)),
                # weight: same block every step -> single DMA, VMEM-resident.
                pl.BlockSpec((groups, ws, hs_g), lambda t: (0, 0, 0)),
            ],
            out_specs=pl.BlockSpec((tile, hidden_size), lambda t: (t, 0)),
        ),
        compiler_params=pltpu.CompilerParams(
            # Frame axis is embarrassingly parallel (2 TCs on v7x).
            dimension_semantics=("parallel",),
        ),
        cost_estimate=cost,
    )(x2, w)

    if t_pad != T:
        out = out[:T]
    return out


def grouped_linear_einsum(x, weight, groups, input_size, hidden_size,
                          compute_dtype=None):
    """Exact torch-module forward: returns (1, 1, hidden_size), float32."""
    out = grouped_linear_einsum_batched(
        x.reshape(1, input_size), weight,
        groups=groups, input_size=input_size, hidden_size=hidden_size,
        compute_dtype=compute_dtype)
    # activation = nn.Identity(); final view(1, 1, -1) is free layout plumbing.
    return out.reshape(1, 1, hidden_size)


def init_weight(key, groups, input_size, hidden_size, dtype=jnp.float32):
    """Deterministic kaiming_uniform_(a=sqrt(5)) equivalent for a
    (groups, ws, hs_g) tensor: fan_in = ws * hs_g, bound = 1/sqrt(fan_in)."""
    ws = input_size // groups
    hs_g = hidden_size // groups
    fan_in = ws * hs_g
    bound = 1.0 / math.sqrt(fan_in)
    return jax.random.uniform(
        key, (groups, ws, hs_g), dtype=dtype, minval=-bound, maxval=bound
    )


if __name__ == "__main__":
    groups = 4
    input_size = 512      # ws   = 128
    hidden_size = 512     # hs_g = 128
    ws = input_size // groups

    key = jax.random.PRNGKey(0)
    k_w, k_x, k_xt = jax.random.split(key, 3)

    weight = init_weight(k_w, groups, input_size, hidden_size)

    # --- 1) Single-frame path (exact module semantics), f32, tight check ---
    x = jax.random.normal(k_x, (1, input_size), dtype=jnp.float32)
    out = grouped_linear_einsum(x, weight, groups, input_size, hidden_size)
    out = jax.block_until_ready(out)

    ref = jnp.matmul(x.reshape(groups, 1, ws), weight).reshape(1, 1, -1)
    assert out.shape == (1, 1, hidden_size), out.shape
    assert jnp.allclose(out, ref, atol=1e-5, rtol=1e-5), "f32 mismatch vs reference"

    # --- 2) Frame-batched path, bf16 weights/activations, f32 accumulate ---
    T = 8
    xt = jax.random.normal(k_xt, (T, input_size), dtype=jnp.float32)
    out_b = grouped_linear_einsum_batched(
        xt, weight, groups=groups, input_size=input_size,
        hidden_size=hidden_size, compute_dtype=jnp.bfloat16)
    out_b = jax.block_until_ready(out_b)

    ref_b = jnp.einsum(
        "tgk,gkn->tgn", xt.reshape(T, groups, ws), weight
    ).reshape(T, hidden_size)
    assert out_b.shape == (T, hidden_size), out_b.shape
    assert out_b.dtype == jnp.float32
    assert jnp.allclose(out_b, ref_b, atol=1e-2, rtol=1e-1), \
        "bf16 batched mismatch vs reference"

    print("KERNEL_OK")
</pallas_src>

<mosaic_0001>
module attributes {stable_mosaic.version = 11 : i64} {
  func.func @kernel(%arg0: i32, %arg1: memref<1x512xf32, #tpu.memory_space<vmem>>, %arg2: memref<4x128x128xf32, #tpu.memory_space<vmem>>, %arg3: memref<1x512xf32, #tpu.memory_space<vmem>>) attributes {dimension_semantics = [#tpu.dimension_semantics<parallel>], iteration_bounds = array<i64: 1>, scalar_prefetch = 0 : i64, scratch_operands = 0 : i64, tpu.core_type = #tpu.core_type<tc>, window_params = [{transform_indices = @transform_0, window_bounds = array<i64: 1, 512>}, {pipeline_mode = #tpu.pipeline_mode<synchronous>, transform_indices = @transform_1, window_bounds = array<i64: 4, 128, 128>}, {transform_indices = @transform_2, window_bounds = array<i64: 1, 512>}]} {
    %c0 = arith.constant 0 : index
    %c0_0 = arith.constant 0 : index
    %0 = vector.load %arg1[%c0, %c0_0] : memref<1x512xf32, #tpu.memory_space<vmem>>, vector<1x512xf32>
    %1 = vector.extract_strided_slice %0 {offsets = [0, 0], sizes = [1, 128], strides = [1, 1]} : vector<1x512xf32> to vector<1x128xf32>
    %c0_1 = arith.constant 0 : index
    %c0_2 = arith.constant 0 : index
    %c0_3 = arith.constant 0 : index
    %2 = vector.load %arg2[%c0_1, %c0_2, %c0_3] : memref<4x128x128xf32, #tpu.memory_space<vmem>>, vector<1x128x128xf32>
    %3 = vector.shape_cast %2 : vector<1x128x128xf32> to vector<128x128xf32>
    %cst = arith.constant dense<0.000000e+00> : vector<1x128xf32>
    %4 = tpu.matmul %1, %3, %cst {dimension_numbers = #tpu.dot_dimension_numbers<[1], [0], [0], [1], [0, 0, 1, 1], [], []>} : vector<1x128xf32>, vector<128x128xf32>, vector<1x128xf32> -> vector<1x128xf32>
    %c0_4 = arith.constant 0 : index
    %c0_5 = arith.constant 0 : index
    %5 = vector.load %arg3[%c0_4, %c0_5] : memref<1x512xf32, #tpu.memory_space<vmem>>, vector<1x128xf32>
    tpu.vector_store %arg3[%c0_4, %c0_5], %4 {strides = array<i32>} : memref<1x512xf32, #tpu.memory_space<vmem>>, vector<1x128xf32>,
    %6 = vector.extract_strided_slice %0 {offsets = [0, 128], sizes = [1, 128], strides = [1, 1]} : vector<1x512xf32> to vector<1x128xf32>
    %c1 = arith.constant 1 : index
    %c0_6 = arith.constant 0 : index
    %c0_7 = arith.constant 0 : index
    %7 = vector.load %arg2[%c1, %c0_6, %c0_7] : memref<4x128x128xf32, #tpu.memory_space<vmem>>, vector<1x128x128xf32>
    %8 = vector.shape_cast %7 : vector<1x128x128xf32> to vector<128x128xf32>
    %cst_8 = arith.constant dense<0.000000e+00> : vector<1x128xf32>
    %9 = tpu.matmul %6, %8, %cst_8 {dimension_numbers = #tpu.dot_dimension_numbers<[1], [0], [0], [1], [0, 0, 1, 1], [], []>} : vector<1x128xf32>, vector<128x128xf32>, vector<1x128xf32> -> vector<1x128xf32>
    %c0_9 = arith.constant 0 : index
    %c128 = arith.constant 128 : index
    %10 = vector.load %arg3[%c0_9, %c128] : memref<1x512xf32, #tpu.memory_space<vmem>>, vector<1x128xf32>
    tpu.vector_store %arg3[%c0_9, %c128], %9 {strides = array<i32>} : memref<1x512xf32, #tpu.memory_space<vmem>>, vector<1x128xf32>,
    %11 = vector.extract_strided_slice %0 {offsets = [0, 256], sizes = [1, 128], strides = [1, 1]} : vector<1x512xf32> to vector<1x128xf32>
    %c2 = arith.constant 2 : index
    %c0_10 = arith.constant 0 : index
    %c0_11 = arith.constant 0 : index
    %12 = vector.load %arg2[%c2, %c0_10, %c0_11] : memref<4x128x128xf32, #tpu.memory_space<vmem>>, vector<1x128x128xf32>
    %13 = vector.shape_cast %12 : vector<1x128x128xf32> to vector<128x128xf32>
    %cst_12 = arith.constant dense<0.000000e+00> : vector<1x128xf32>
    %14 = tpu.matmul %11, %13, %cst_12 {dimension_numbers = #tpu.dot_dimension_numbers<[1], [0], [0], [1], [0, 0, 1, 1], [], []>} : vector<1x128xf32>, vector<128x128xf32>, vector<1x128xf32> -> vector<1x128xf32>
    %c0_13 = arith.constant 0 : index
    %c256 = arith.constant 256 : index
    %15 = vector.load %arg3[%c0_13, %c256] : memref<1x512xf32, #tpu.memory_space<vmem>>, vector<1x128xf32>
    tpu.vector_store %arg3[%c0_13, %c256], %14 {strides = array<i32>} : memref<1x512xf32, #tpu.memory_space<vmem>>, vector<1x128xf32>,
    %16 = vector.extract_strided_slice %0 {offsets = [0, 384], sizes = [1, 128], strides = [1, 1]} : vector<1x512xf32> to vector<1x128xf32>
    %c3 = arith.constant 3 : index
    %c0_14 = arith.constant 0 : index
    %c0_15 = arith.constant 0 : index
    %17 = vector.load %arg2[%c3, %c0_14, %c0_15] : memref<4x128x128xf32, #tpu.memory_space<vmem>>, vector<1x128x128xf32>
    %18 = vector.shape_cast %17 : vector<1x128x128xf32> to vector<128x128xf32>
    %cst_16 = arith.constant dense<0.000000e+00> : vector<1x128xf32>
    %19 = tpu.matmul %16, %18, %cst_16 {dimension_numbers = #tpu.dot_dimension_numbers<[1], [0], [0], [1], [0, 0, 1, 1], [], []>} : vector<1x128xf32>, vector<128x128xf32>, vector<1x128xf32> -> vector<1x128xf32>
    %c0_17 = arith.constant 0 : index
    %c384 = arith.constant 384 : index
    %20 = vector.load %arg3[%c0_17, %c384] : memref<1x512xf32, #tpu.memory_space<vmem>>, vector<1x128xf32>
    tpu.vector_store %arg3[%c0_17, %c384], %19 {strides = array<i32>} : memref<1x512xf32, #tpu.memory_space<vmem>>, vector<1x128xf32>,
    return
  }
  func.func @transform_0(%arg0: i32) -> (i32, i32) {
    %c0_i32 = arith.constant 0 : i32
    %c0_i32_0 = arith.constant 0 : i32
    return %arg0, %c0_i32 : i32, i32
  }
  func.func @transform_1(%arg0: i32) -> (i32, i32, i32) {
    %c0_i32 = arith.constant 0 : i32
    %c0_i32_0 = arith.constant 0 : i32
    %c0_i32_1 = arith.constant 0 : i32
    %c0_i32_2 = arith.constant 0 : i32
    return %c0_i32, %c0_i32_0, %c0_i32_1 : i32, i32, i32
  }
  func.func @transform_2(%arg0: i32) -> (i32, i32) {
    %c0_i32 = arith.constant 0 : i32
    %c0_i32_0 = arith.constant 0 : i32
    return %arg0, %c0_i32 : i32, i32
  }
}

</mosaic_0001>

<bundles_post_ra>
// kernel: tpu_custom_call.1
= control target key start
LH: loop header
LB: loop body
LE: loop exit
PB: predicated region body
PF: predicated region fallthrough
CT: control target
= control target key end

     0   :  { %7 = vsyncpa [#allocation3], 0  ;;  %s929_s0 = inlined_call_operand.hbm [shape: f32[1,512], index: 0, kind: input, shape index: {}]   ;;  %s930_s1 = inlined_call_operand.hbm [shape: f32[4,128,128], index: 1, kind: input, shape index: {}]   ;;  %s931_s2 = inlined_call_operand.hbm [shape: f32[1,512], index: 2, kind: output, shape index: {}]  }
   0x1   :  { %8 = vsyncpa [#allocation6], 0 }
   0x2   :  { %9 = vsyncpa [#allocation4], 0  ;;  %s810_s9 = smov [#allocation2]   ;;  %s811_s11 = smov [#allocation5]  }
   0x3   :  { %s16_s10 = sshll.u32 %s810_s9, 4  ;;  %s25_s12 = sshll.u32 %s811_s11, 4  ;;  %s17_s10 = int_to_ptr.vmem [resolvable:$true] %s16_s10  ;;  %s833_s12 = int_to_ptr.vmem [resolvable:$true] %s25_s12 }
   0x4   :  { %s738_s15 = scalar_lea.hbm %s929_s0, 64 }
   0x5   :  { %p739_p0 = scmp.ne.s32.totalorder %s929_s0, %s738_s15  ;;  %p742_p1 = scmp.lt.u32.totalorder %s738_s15, %s929_s0 }
   0x7   :  { %p744_p2 = pnand %p742_p1, %p739_p0 }
   0x9   :  { %747 = shalt.err (!%p744_p2)
}
   0xa   :  { %s748_s20 = scalar_lea.vmem %s17_s10, 64  ;;  %p753_p4 = scmp.lt.s32.totalorder %s17_s10, %s17_s10 }
   0xb   :  { %p749_p3 = scmp.ne.s32.totalorder %s17_s10, %s748_s20  ;;  %p754_p5 = scmp.lt.s32.totalorder %s748_s20, %s748_s20 }
   0xd   :  { %p755_p6 = por %p754_p5, %p753_p4 }
   0xf   :  { %p756_p7 = pnand %p755_p6, %p749_p3 }
  0x11   :  { %759 = shalt.err (!%p756_p7)
}
  0x12   :  { %19 = dma.hbm_to_vmem [thread:$0]  %s929_s0, 64, %s17_s10, [#allocation3]  }
  0x13   :  { %s760_s25 = scalar_lea.hbm %s930_s1, 8192 }
  0x14   :  { %p761_p8 = scmp.ne.s32.totalorder %s930_s1, %s760_s25  ;;  %p764_p9 = scmp.lt.u32.totalorder %s760_s25, %s930_s1 }
  0x16   :  { %p766_p10 = pnand %p764_p9, %p761_p8 }
  0x18   :  { %769 = shalt.err (!%p766_p10)
}
  0x19   :  { %s770_s30 = scalar_lea.vmem %s833_s12, 8192  ;;  %p775_p12 = scmp.lt.s32.totalorder %s833_s12, %s833_s12 }
  0x1a   :  { %p771_p11 = scmp.ne.s32.totalorder %s833_s12, %s770_s30  ;;  %p776_p13 = scmp.lt.s32.totalorder %s770_s30, %s770_s30 }
  0x1c   :  { %p777_p0 = por %p776_p13, %p775_p12 }
  0x1e   :  { %p778_p1 = pnand %p777_p0, %p771_p11 }
  0x20   :  { %781 = shalt.err (!%p778_p1)
}
  0x21   :  { %s812_s0 = smov 128   ;;  %s813_s3 = smov 8  }
  0x22   :  { %31 = dma.hbm_to_vmem [thread:$0]  %s930_s1, 8192, %s833_s12, [#allocation6], %s812_s0, %s812_s0, %s813_s3  }
  0x23   :  { %804 = dma.done.wait [#allocation3], 64  }
  0x24   :  { %805 = vsyncadd [#allocation3], 4294967232 }
  0x25   :  { %806 = dma.done.wait [#allocation6], 8192  }
  0x26   :  { %807 = vsyncadd [#allocation6], 4294959104  ;;  %v814_v0 = vmov 0.0|0.0   ;;  %vm815_vm0 = vmmov 0   ;;  %v816_v1 = vmov 0.0   ;;  %v39_v2 = vld [vmem:[#allocation5] sm:$0xff]  ;;  %v125_v37 = vlaneseq }
  0x27   :  { %634 = vmatprep.subr.bf16.mxu0 %v814_v0  ;;  %658 = vmatprep.subr.bf16.mxu1 %v814_v0  ;;  %v40_v3 = vld [vmem:[#allocation5 + $0x8] sm:$0xff]  ;;  %v131_v4 = vld [vmem:[#allocation5 + $0x80] sm:$0xff]  ;;  %v41_v7 = vld [vmem:[#allocation5 + $0x10] sm:$0xff]  ;;  %s817_s1 = smov [#allocation7]  }
  0x28   :  { %526 = vmatprep.mubr.msk.f32.mxu0 %vm815_vm0, %v816_v1  ;;  %561 = vmatprep.mubr.msk.f32.mxu1 %vm815_vm0, %v816_v1  ;;  %v635_v5 = vpack.c.bf16 %v40_v3, %v39_v2  ;;  %v132_v6 = vld [vmem:[#allocation5 + $0x88] sm:$0xff]  ;;  %v42_v8 = vld [vmem:[#allocation5 + $0x18] sm:$0xff]  ;;  %v133_v10 = vld [vmem:[#allocation5 + $0x90] sm:$0xff]  ;;  %v881_v44 = vshrl.u32 %v125_v37, 7  ;;  %vm127_vm1 = vcmp.lt.s32.totalorder %v125_v37, 128  ;;  %s416_s6 = sshll.u32 %s817_s1, 4  ;;  %s417_s6 = int_to_ptr.vmem [resolvable:$true] %s416_s6 }
  0x29   :  { %v659_v9 = vpack.c.bf16 %v132_v6, %v131_v4  ;;  %v134_v11 = vld [vmem:[#allocation5 + $0x98] sm:$0xff]  ;;  %v638_v12 = vpack.c.bf16 %v42_v8, %v41_v7  ;;  %v43_v14 = vld [vmem:[#allocation5 + $0x20] sm:$0xff]  ;;  %v44_v15 = vld [vmem:[#allocation5 + $0x28] sm:$0xff]  ;;  %s782_s7 = scalar_lea.vmem %s417_s6, 64  ;;  %p787_p3 = scmp.lt.s32.totalorder %s417_s6, %s417_s6 }
  0x2a   :  { %636 = vmatpush3.bf16.msra.mxu0 %v635_v5  ;;  %v662_v13 = vpack.c.bf16 %v134_v11, %v133_v10  ;;  %v135_v16 = vld [vmem:[#allocation5 + $0xa0] sm:$0xff]  ;;  %v136_v17 = vld [vmem:[#allocation5 + $0xa8] sm:$0xff]  ;;  %v641_v18 = vpack.c.bf16 %v44_v15, %v43_v14  ;;  %v45_v20 = vld [vmem:[#allocation5 + $0x30] sm:$0xff]  ;;  %v150_v51 = vsub.s32 1, %v881_v44  ;;  %p783_p2 = scmp.ne.s32.totalorder %s417_s6, %s782_s7  ;;  %p788_p4 = scmp.lt.s32.totalorder %s782_s7, %s782_s7 }
  0x2b   :  { %660 = vmatpush3.bf16.msra.mxu1 %v659_v9  ;;  %637 = vmatprep.subr.bf16.mxu0 %v814_v0  ;;  %v665_v19 = vpack.c.bf16 %v136_v17, %v135_v16  ;;  %v46_v21 = vld [vmem:[#allocation5 + $0x38] sm:$0xff]  ;;  %v137_v22 = vld [vmem:[#allocation5 + $0xb0] sm:$0xff]  ;;  %v47_v26 = vld [vmem:[#allocation5 + $0x40] sm:$0xff] }
  0x2c   :  { %661 = vmatprep.subr.bf16.mxu1 %v814_v0  ;;  %v138_v23 = vld [vmem:[#allocation5 + $0xb8] sm:$0xff]  ;;  %v644_v24 = vpack.c.bf16 %v46_v21, %v45_v20  ;;  %v48_v27 = vld [vmem:[#allocation5 + $0x48] sm:$0xff]  ;;  %v139_v28 = vld [vmem:[#allocation5 + $0xc0] sm:$0xff]  ;;  %p789_p5 = por %p788_p4, %p787_p3 }
  0x2d   :  { %v668_v25 = vpack.c.bf16 %v138_v23, %v137_v22  ;;  %v140_v29 = vld [vmem:[#allocation5 + $0xc8] sm:$0xff]  ;;  %v647_v30 = vpack.c.bf16 %v48_v27, %v47_v26  ;;  %v49_v32 = vld [vmem:[#allocation5 + $0x50] sm:$0xff]  ;;  %v50_v33 = vld [vmem:[#allocation5 + $0x58] sm:$0xff] }
  0x2e   :  { %639 = vmatpush3.bf16.msra.mxu0 %v638_v12  ;;  %v671_v31 = vpack.c.bf16 %v140_v29, %v139_v28  ;;  %v141_v34 = vld [vmem:[#allocation5 + $0xd0] sm:$0xff]  ;;  %v142_v35 = vld [vmem:[#allocation5 + $0xd8] sm:$0xff]  ;;  %v650_v36 = vpack.c.bf16 %v50_v33, %v49_v32  ;;  %v51_v39 = vld [vmem:[#allocation5 + $0x60] sm:$0xff]  ;;  %p790_p6 = pnand %p789_p5, %p783_p2 }
  0x2f   :  { %663 = vmatpush3.bf16.msra.mxu1 %v662_v13  ;;  %640 = vmatprep.subr.bf16.mxu0 %v814_v0  ;;  %v674_v38 = vpack.c.bf16 %v142_v35, %v141_v34  ;;  %v52_v40 = vld [vmem:[#allocation5 + $0x68] sm:$0xff]  ;;  %v143_v41 = vld [vmem:[#allocation5 + $0xe0] sm:$0xff]  ;;  %v53_v46 = vld [vmem:[#allocation5 + $0x70] sm:$0xff] }
  0x30   :  { %664 = vmatprep.subr.bf16.mxu1 %v814_v0  ;;  %v144_v42 = vld [vmem:[#allocation5 + $0xe8] sm:$0xff]  ;;  %v653_v43 = vpack.c.bf16 %v52_v40, %v51_v39  ;;  %v54_v47 = vld [vmem:[#allocation5 + $0x78] sm:$0xff]  ;;  %v145_v48 = vld [vmem:[#allocation5 + $0xf0] sm:$0xff]  ;;  %v243_v39 = vsub.s32 2, %v881_v44 }
  0x31   :  { %v677_v45 = vpack.c.bf16 %v144_v42, %v143_v41  ;;  %v146_v49 = vld [vmem:[#allocation5 + $0xf8] sm:$0xff]  ;;  %v656_v50 = vpack.c.bf16 %v54_v47, %v53_v46  ;;  %v225_v54 = vld [vmem:[#allocation5 + $0x100] sm:$0xff]  ;;  %v226_v55 = vld [vmem:[#allocation5 + $0x108] sm:$0xff]  ;;  %v336_v41 = vsub.s32 3, %v881_v44 }
  0x32   :  { %642 = vmatpush3.bf16.msra.mxu0 %v641_v18  ;;  %v680_v52 = vpack.c.bf16 %v146_v49, %v145_v48  ;;  %v887_v53 = vld [vmem:[#allocation2] sm:$0xf]  ;;  %v318_v56 = vld [vmem:[#allocation5 + $0x180] sm:$0xff]  ;;  %v319_v57 = vld [vmem:[#allocation5 + $0x188] sm:$0xff]  ;;  %v683_v59 = vpack.c.bf16 %v226_v55, %v225_v54 }
  0x33   :  { %666 = vmatpush3.bf16.msra.mxu1 %v665_v19  ;;  %643 = vmatprep.subr.bf16.mxu0 %v814_v0  ;;  %v151_v58 = vrot.slane %v887_v53, %v150_v51  ;;  %v707_v60 = vpack.c.bf16 %v319_v57, %v318_v56  ;;  %v227_v61 = vld [vmem:[#allocation5 + $0x110] sm:$0xff]  ;;  %v228_v62 = vld [vmem:[#allocation5 + $0x118] sm:$0xff]  ;;  %v229_v5 = vld [vmem:[#allocation5 + $0x120] sm:$0xff] }
  0x34   :  { %667 = vmatprep.subr.bf16.mxu1 %v814_v0  ;;  %v320_v63 = vld [vmem:[#allocation5 + $0x190] sm:$0xff]  ;;  %v321_v2 = vld [vmem:[#allocation5 + $0x198] sm:$0xff]  ;;  %v686_v3 = vpack.c.bf16 %v228_v62, %v227_v61  ;;  %v230_v6 = vld [vmem:[#allocation5 + $0x128] sm:$0xff] }
  0x35   :  { %v710_v4 = vpack.c.bf16 %v321_v2, %v320_v63  ;;  %v322_v7 = vld [vmem:[#allocation5 + $0x1a0] sm:$0xff]  ;;  %v323_v8 = vld [vmem:[#allocation5 + $0x1a8] sm:$0xff]  ;;  %v689_v9 = vpack.c.bf16 %v230_v6, %v229_v5  ;;  %v231_v11 = vld [vmem:[#allocation5 + $0x130] sm:$0xff] }
  0x36   :  { %645 = vmatpush3.bf16.msra.mxu0 %v644_v24  ;;  %v713_v10 = vpack.c.bf16 %v323_v8, %v322_v7  ;;  %v232_v12 = vld [vmem:[#allocation5 + $0x138] sm:$0xff]  ;;  %v324_v13 = vld [vmem:[#allocation5 + $0x1b0] sm:$0xff]  ;;  %v233_v17 = vld [vmem:[#allocation5 + $0x140] sm:$0xff] }
  0x37   :  { %669 = vmatpush3.bf16.msra.mxu1 %v668_v25  ;;  %646 = vmatprep.subr.bf16.mxu0 %v814_v0  ;;  %v325_v14 = vld [vmem:[#allocation5 + $0x1b8] sm:$0xff]  ;;  %v692_v15 = vpack.c.bf16 %v232_v12, %v231_v11  ;;  %v326_v18 = vld [vmem:[#allocation5 + $0x1c0] sm:$0xff]  ;;  %v327_v19 = vld [vmem:[#allocation5 + $0x1c8] sm:$0xff] }
  0x38   :  { %670 = vmatprep.subr.bf16.mxu1 %v814_v0  ;;  %v716_v16 = vpack.c.bf16 %v325_v14, %v324_v13  ;;  %v719_v21 = vpack.c.bf16 %v327_v19, %v326_v18  ;;  %v235_v22 = vld [vmem:[#allocation5 + $0x150] sm:$0xff]  ;;  %v236_v23 = vld [vmem:[#allocation5 + $0x158] sm:$0xff]  ;;  %v237_v28 = vld [vmem:[#allocation5 + $0x160] sm:$0xff] }
  0x39   :  { %v328_v24 = vld [vmem:[#allocation5 + $0x1d0] sm:$0xff]  ;;  %v329_v25 = vld [vmem:[#allocation5 + $0x1d8] sm:$0xff]  ;;  %v698_v26 = vpack.c.bf16 %v236_v23, %v235_v22  ;;  %v238_v29 = vld [vmem:[#allocation5 + $0x168] sm:$0xff] }
  0x3a   :  { %648 = vmatpush3.bf16.msra.mxu0 %v647_v30  ;;  %v722_v27 = vpack.c.bf16 %v329_v25, %v328_v24  ;;  %v330_v30 = vld [vmem:[#allocation5 + $0x1e0] sm:$0xff]  ;;  %v701_v32 = vpack.c.bf16 %v238_v29, %v237_v28  ;;  %v239_v34 = vld [vmem:[#allocation5 + $0x170] sm:$0xff]  ;;  %v240_v35 = vld [vmem:[#allocation5 + $0x178] sm:$0xff] }
  0x3b   :  { %672 = vmatpush3.bf16.msra.mxu1 %v671_v31  ;;  %649 = vmatprep.subr.bf16.mxu0 %v814_v0  ;;  %v331_v31 = vld [vmem:[#allocation5 + $0x1e8] sm:$0xff]  ;;  %v704_v40 = vpack.c.bf16 %v240_v35, %v239_v34 }
  0x3c   :  { %673 = vmatprep.subr.bf16.mxu1 %v814_v0  ;;  %v725_v33 = vpack.c.bf16 %v331_v31, %v330_v30 }
  0x3e   :  { %651 = vmatpush3.bf16.msra.mxu0 %v650_v36  ;;  %v332_v36 = vld [vmem:[#allocation5 + $0x1f0] sm:$0xff] }
  0x3f   :  { %675 = vmatpush3.bf16.msra.mxu1 %v674_v38  ;;  %652 = vmatprep.subr.bf16.mxu0 %v814_v0  ;;  %v333_v38 = vld [vmem:[#allocation5 + $0x1f8] sm:$0xff] }
  0x40   :  { %676 = vmatprep.subr.bf16.mxu1 %v814_v0  ;;  %v728_v42 = vpack.c.bf16 %v333_v38, %v332_v36 }
  0x42   :  { %654 = vmatpush3.bf16.msra.mxu0 %v653_v43  ;;  %v244_v43 = vrot.slane %v887_v53, %v243_v39 }
  0x43   :  { %678 = vmatpush3.bf16.msra.mxu1 %v677_v45  ;;  %655 = vmatprep.subr.bf16.mxu0 %v814_v0  ;;  %v337_v45 = vrot.slane %v887_v53, %v336_v41 }
  0x44   :  { %679 = vmatprep.subr.bf16.mxu1 %v814_v0 }
  0x46   :  { %657 = vmatpush3.bf16.msra.mxu0 %v656_v50 }
  0x47   :  { %681 = vmatpush3.bf16.msra.mxu1 %v680_v52  ;;  %682 = vmatprep.subr.bf16.mxu0 %v814_v0 }
  0x48   :  { %706 = vmatprep.subr.bf16.mxu1 %v814_v0 }
  0x49   :  { %527 = vmatmul.mubr.f32.vlgmr.msra.gmra.mrb[0].mxu0 %v887_v53 }
  0x4a   :  { %562 = vmatmul.mubr.f32.vlgmr.msra.gmra.mrb[0].mxu1 %v151_v58  ;;  %684 = vmatpush3.bf16.msra.mxu0 %v683_v59 }
  0x4b   :  { %708 = vmatpush3.bf16.msra.mxu1 %v707_v60  ;;  %685 = vmatprep.subr.bf16.mxu0 %v814_v0 }
  0x4c   :  { %709 = vmatprep.subr.bf16.mxu1 %v814_v0  ;;  %596 = vmatprep.mubr.msk.f32.mxu0 %vm815_vm0, %v816_v1 }
  0x4d   :  { %631 = vmatprep.mubr.msk.f32.mxu1 %vm815_vm0, %v816_v1  ;;  %v234_v1 = vld [vmem:[#allocation5 + $0x148] sm:$0xff] }
  0x4e   :  { %687 = vmatpush3.bf16.msra.mxu0 %v686_v3  ;;  %v695_v20 = vpack.c.bf16 %v234_v1, %v233_v17 }
  0x4f   :  { %711 = vmatpush3.bf16.msra.mxu1 %v710_v4  ;;  %688 = vmatprep.subr.bf16.mxu0 %v814_v0 }
  0x50   :  { %712 = vmatprep.subr.bf16.mxu1 %v814_v0 }
  0x52   :  { %690 = vmatpush3.bf16.msra.mxu0 %v689_v9 }
  0x53   :  { %714 = vmatpush3.bf16.msra.mxu1 %v713_v10  ;;  %691 = vmatprep.subr.bf16.mxu0 %v814_v0 }
  0x54   :  { %715 = vmatprep.subr.bf16.mxu1 %v814_v0 }
  0x56   :  { %693 = vmatpush3.bf16.msra.mxu0 %v692_v15 }
  0x57   :  { %717 = vmatpush3.bf16.msra.mxu1 %v716_v16  ;;  %694 = vmatprep.subr.bf16.mxu0 %v814_v0 }
  0x58   :  { %718 = vmatprep.subr.bf16.mxu1 %v814_v0 }
  0x5a   :  { %696 = vmatpush3.bf16.msra.mxu0 %v695_v20 }
  0x5b   :  { %720 = vmatpush3.bf16.msra.mxu1 %v719_v21  ;;  %697 = vmatprep.subr.bf16.mxu0 %v814_v0 }
  0x5c   :  { %721 = vmatprep.subr.bf16.mxu1 %v814_v0 }
  0x5e   :  { %699 = vmatpush3.bf16.msra.mxu0 %v698_v26 }
  0x5f   :  { %723 = vmatpush3.bf16.msra.mxu1 %v722_v27  ;;  %700 = vmatprep.subr.bf16.mxu0 %v814_v0 }
  0x60   :  { %724 = vmatprep.subr.bf16.mxu1 %v814_v0 }
  0x62   :  { %702 = vmatpush3.bf16.msra.mxu0 %v701_v32 }
  0x63   :  { %726 = vmatpush3.bf16.msra.mxu1 %v725_v33  ;;  %703 = vmatprep.subr.bf16.mxu0 %v814_v0 }
  0x64   :  { %727 = vmatprep.subr.bf16.mxu1 %v814_v0 }
  0x66   :  { %705 = vmatpush3.bf16.msra.mxu0 %v704_v40 }
  0x67   :  { %729 = vmatpush3.bf16.msra.mxu1 %v728_v42 }
  0x69   :  { %597 = vmatmul.mubr.f32.vlgmr.msra.gmra.mrb[2].mxu0 %v244_v43 }
  0x6a   :  { %632 = vmatmul.mubr.f32.vlgmr.msra.gmra.mrb[2].mxu1 %v337_v45 }
 0x11c   :  { %v121_v46 = vpop.f32.mrb[0].mxu0 }
 0x11d   :  { %129 = vst.msk [vmem:[#allocation7] sm:$0x1] %vm127_vm1, %v121_v46  ;;  %v219_v47 = vpop.f32.mrb[0].mxu1  ;;  %v528_v44 = vpop.f32.mrb[1].mxu0 }
 0x11e   :  { %223 = vst.msk [vmem:[#allocation7 + $0x1] sm:$0x1] %vm127_vm1, %v219_v47  ;;  %v563_v48 = vpop.f32.mrb[1].mxu1 }
 0x13c   :  { %v312_v49 = vpop.f32.mrb[2].mxu0 }
 0x13d   :  { %316 = vst.msk [vmem:[#allocation7 + $0x2] sm:$0x1] %vm127_vm1, %v312_v49  ;;  %v405_v0 = vpop.f32.mrb[2].mxu1  ;;  %v598_v50 = vpop.f32.mrb[3].mxu0 }
 0x13e   :  { %409 = vst.msk [vmem:[#allocation7 + $0x3] sm:$0x1] %vm127_vm1, %v405_v0  ;;  %v633_v51 = vpop.f32.mrb[3].mxu1 }
 0x13f   :  { %793 = shalt.err (!%p790_p6)
}
 0x140   :  { %s794_s10 = scalar_lea.hbm %s931_s2, 64 }
 0x141   :  { %p795_p7 = scmp.ne.s32.totalorder %s931_s2, %s794_s10  ;;  %p798_p8 = scmp.lt.u32.totalorder %s794_s10, %s931_s2 }
 0x143   :  { %p800_p9 = pnand %p798_p8, %p795_p7 }
 0x145   :  { %803 = shalt.err (!%p800_p9)
}
 0x146   :  { %419 = dma.vmem_to_hbm [thread:$0]  %s417_s6, 64, %s931_s2, [#allocation4]  }
 0x147   :  { %808 = dma.done.wait [#allocation4], 64  }
 0x148   :  { %809 = vsyncadd [#allocation4], 4294967232 }
 0x149   :  { %423 = vsyncpa [#allocation3], 1 }
 0x14a   :  { %424 = vsyncpa [#allocation6], 1 }
 0x14b   :  { %425 = vsyncpa [#allocation4], 1 }

</bundles_post_ra>
